<compile_context>
chip_gen: v5e
topology: v5e:2x2
jax: 0.10.0
libtpu: 0.0.40
codegen_flags: <defaults>
</compile_context>

<pallas_src>
import functools

import jax
import jax.numpy as jnp
from jax.experimental import pallas as pl
from jax.experimental.pallas import tpu as pltpu


def _round_up(x: int, m: int) -> int:
    return (x + m - 1) // m * m


def _pick_tile_s(s: int, c: int) -> int:
    """Spatial tile: one f32 logits block <= ~2 MiB (x2 inputs x2 buffers)."""
    max_ts = (2 * 1024 * 1024) // (4 * max(c, 1))
    max_ts = max(128, min(max_ts, 32768))
    max_ts = (max_ts // 128) * 128
    return min(max_ts, _round_up(s, 128))


def _psp_ce_kernel(main_ref, aux_ref, tgt_ref,
                   out_main_ref, out_aux_ref, out_cnt_ref,
                   acc_main, acc_aux, acc_cnt):
    s_idx = pl.program_id(1)

    @pl.when(s_idx == 0)
    def _():
        acc_main[...] = jnp.zeros_like(acc_main)
        acc_aux[...] = jnp.zeros_like(acc_aux)
        acc_cnt[...] = jnp.zeros_like(acc_cnt)

    t = tgt_ref[0]                                     # (1, TS) int32
    num_classes = main_ref.shape[1]
    valid = jnp.logical_and(t >= 0, t < num_classes)   # (1, TS) bool

    # One-hot mask of the target class along the (sublane) class axis,
    # shared by main and aux heads.
    cls = jax.lax.broadcasted_iota(jnp.int32, (num_classes, t.shape[-1]), 0)
    onehot = cls == t                                  # (C, TS) bool

    def masked_ce(x_ref):
        x = x_ref[0].astype(jnp.float32)               # (C, TS), in-kernel upcast
        m = jnp.max(x, axis=0, keepdims=True)          # (1, TS)
        lse = m + jnp.log(jnp.sum(jnp.exp(x - m), axis=0, keepdims=True))
        tgt_logit = jnp.sum(jnp.where(onehot, x, 0.0), axis=0, keepdims=True)
        return jnp.where(valid, lse - tgt_logit, 0.0)  # (1, TS)

    acc_main[...] += masked_ce(main_ref)
    acc_aux[...] += masked_ce(aux_ref)
    acc_cnt[...] += valid.astype(jnp.float32)

    @pl.when(s_idx == pl.num_programs(1) - 1)
    def _():
        out_main_ref[0] = jnp.sum(acc_main[...], axis=-1, keepdims=True)
        out_aux_ref[0] = jnp.sum(acc_aux[...], axis=-1, keepdims=True)
        out_cnt_ref[0] = jnp.sum(acc_cnt[...], axis=-1, keepdims=True)


def _psp_ce_sums(main_ncs, aux_ncs, tgt_n1s, tile_s):
    n, c, s = main_ncs.shape
    assert s % tile_s == 0
    grid = (n, s // tile_s)

    logit_spec = pl.BlockSpec((1, c, tile_s), lambda ni, si: (ni, 0, si))
    tgt_spec = pl.BlockSpec((1, 1, tile_s), lambda ni, si: (ni, 0, si))
    out_spec = pl.BlockSpec((1, 1, 1), lambda ni, si: (ni, 0, 0))

    out_shape = tuple(jax.ShapeDtypeStruct((n, 1, 1), jnp.float32) for _ in range(3))

    return pl.pallas_call(
        _psp_ce_kernel,
        out_shape=out_shape,
        grid_spec=pltpu.PrefetchScalarGridSpec(
            num_scalar_prefetch=0,
            grid=grid,
            in_specs=[logit_spec, logit_spec, tgt_spec],
            out_specs=(out_spec, out_spec, out_spec),
            scratch_shapes=[
                pltpu.VMEM((1, tile_s), jnp.float32),
                pltpu.VMEM((1, tile_s), jnp.float32),
                pltpu.VMEM((1, tile_s), jnp.float32),
            ],
        ),
        compiler_params=pltpu.CompilerParams(
            dimension_semantics=("parallel", "arbitrary")),
    )(main_ncs, aux_ncs, tgt_n1s)


@functools.partial(jax.jit, static_argnames=("aux_weight",))
def psp_loss(main_logits, aux_logits, targets, aux_weight=0.4):
    """Equivalent of PSPLoss.forward((main, aux), targets)."""
    n, c, h, w = main_logits.shape
    s = h * w
    main = main_logits.reshape(n, c, s)          # free: contiguous collapse
    aux = aux_logits.reshape(n, c, s)
    tgt = targets.reshape(n, 1, s).astype(jnp.int32)

    ts = _pick_tile_s(s, c)
    s_pad = _round_up(s, ts)
    if s_pad != s:
        # Padded pixels get target -1 -> excluded from sum and denominator.
        # (One extra HBM copy, only taken for non-tile-divisible spatial sizes.)
        pad = s_pad - s
        main = jnp.pad(main, ((0, 0), (0, 0), (0, pad)))
        aux = jnp.pad(aux, ((0, 0), (0, 0), (0, pad)))
        tgt = jnp.pad(tgt, ((0, 0), (0, 0), (0, pad)), constant_values=-1)

    sum_main, sum_aux, cnt = _psp_ce_sums(main, aux, tgt, ts)
    total_cnt = jnp.maximum(jnp.sum(cnt), 1.0)
    loss_main = jnp.sum(sum_main) / total_cnt
    loss_aux = jnp.sum(sum_aux) / total_cnt
    return loss_main + jnp.float32(aux_weight) * loss_aux


if __name__ == "__main__":
    def ref_psp_loss(main_o, aux_o, tgt, w):
        # Same math as F.cross_entropy(..., reduction='mean') on in-range labels.
        def ce(logits, t):
            _, c, _, _ = logits.shape
            x = jnp.transpose(logits, (0, 2, 3, 1)).reshape(-1, c).astype(jnp.float32)
            tt = t.reshape(-1)
            lse = jax.nn.logsumexp(x, axis=-1)
            tl = jnp.take_along_axis(x, tt[:, None], axis=-1)[:, 0]
            return jnp.mean(lse - tl)
        return ce(main_o, tgt) + w * ce(aux_o, tgt)

    key = jax.random.PRNGKey(0)

    # Case 1: tile-divisible spatial size.
    N, C, H, W = 2, 8, 16, 16
    k0, k1, k2, k3 = jax.random.split(key, 4)
    main_out = jax.random.normal(k0, (N, C, H, W), dtype=jnp.float32)
    aux_out = jax.random.normal(k1, (N, C, H, W), dtype=jnp.float32)
    targets = jax.random.randint(k2, (N, H, W), 0, C, dtype=jnp.int32)

    loss = psp_loss(main_out, aux_out, targets, aux_weight=0.4)
    jax.block_until_ready(loss)
    ref = ref_psp_loss(main_out, aux_out, targets, 0.4)
    assert jnp.allclose(loss, ref, rtol=1e-5, atol=1e-5), (loss, ref)

    # Case 2: non-divisible spatial size (exercises padding + ignore mask path).
    H2 = W2 = 15
    k4, k5, k6 = jax.random.split(k3, 3)
    main2 = jax.random.normal(k4, (N, C, H2, W2), dtype=jnp.float32)
    aux2 = jax.random.normal(k5, (N, C, H2, W2), dtype=jnp.float32)
    tgt2 = jax.random.randint(k6, (N, H2, W2), 0, C, dtype=jnp.int32)

    loss2 = psp_loss(main2, aux2, tgt2, aux_weight=0.4)
    jax.block_until_ready(loss2)
    ref2 = ref_psp_loss(main2, aux2, tgt2, 0.4)
    assert jnp.allclose(loss2, ref2, rtol=1e-5, atol=1e-5), (loss2, ref2)

    print("KERNEL_OK")
</pallas_src>

<mosaic_0001>
module attributes {stable_mosaic.version = 11 : i64} {
  func.func @_psp_ce_kernel(%arg0: i32, %arg1: i32, %arg2: memref<1x8x256xf32, #tpu.memory_space<vmem>>, %arg3: memref<1x8x256xf32, #tpu.memory_space<vmem>>, %arg4: memref<1x1x256xi32, #tpu.memory_space<vmem>>, %arg5: memref<1x1x1xf32, #tpu.memory_space<vmem>>, %arg6: memref<1x1x1xf32, #tpu.memory_space<vmem>>, %arg7: memref<1x1x1xf32, #tpu.memory_space<vmem>>, %arg8: memref<1x256xf32, #tpu.memory_space<vmem>>, %arg9: memref<1x256xf32, #tpu.memory_space<vmem>>, %arg10: memref<1x256xf32, #tpu.memory_space<vmem>>) attributes {dimension_semantics = [#tpu.dimension_semantics<parallel>, #tpu.dimension_semantics<arbitrary>], iteration_bounds = array<i64: 2, 1>, scalar_prefetch = 0 : i64, scratch_operands = 3 : i64, tpu.core_type = #tpu.core_type<tc>, window_params = [{transform_indices = @transform_0, window_bounds = array<i64: 1, 8, 256>}, {transform_indices = @transform_1, window_bounds = array<i64: 1, 8, 256>}, {transform_indices = @transform_2, window_bounds = array<i64: 1, 1, 256>}, {transform_indices = @transform_3, window_bounds = array<i64: 1, 1, 1>}, {transform_indices = @transform_4, window_bounds = array<i64: 1, 1, 1>}, {transform_indices = @transform_5, window_bounds = array<i64: 1, 1, 1>}]} {
    %c0_i32 = arith.constant 0 : i32
    %0 = arith.cmpi eq, %arg1, %c0_i32 : i32
    %1 = arith.extui %0 : i1 to i32
    %c0_i32_0 = arith.constant 0 : i32
    %2 = arith.cmpi ne, %1, %c0_i32_0 : i32
    scf.if %2 {
      %cst_33 = arith.constant 0.000000e+00 : f32
      %63 = vector.broadcast %cst_33 : f32 to vector<1x256xf32>
      %c0_34 = arith.constant 0 : index
      %c0_35 = arith.constant 0 : index
      %64 = vector.load %arg8[%c0_34, %c0_35] : memref<1x256xf32, #tpu.memory_space<vmem>>, vector<1x256xf32>
      tpu.vector_store %arg8[%c0_34, %c0_35], %63 {strides = array<i32>} : memref<1x256xf32, #tpu.memory_space<vmem>>, vector<1x256xf32>,
      %cst_36 = arith.constant 0.000000e+00 : f32
      %65 = vector.broadcast %cst_36 : f32 to vector<1x256xf32>
      %c0_37 = arith.constant 0 : index
      %c0_38 = arith.constant 0 : index
      %66 = vector.load %arg9[%c0_37, %c0_38] : memref<1x256xf32, #tpu.memory_space<vmem>>, vector<1x256xf32>
      tpu.vector_store %arg9[%c0_37, %c0_38], %65 {strides = array<i32>} : memref<1x256xf32, #tpu.memory_space<vmem>>, vector<1x256xf32>,
      %cst_39 = arith.constant 0.000000e+00 : f32
      %67 = vector.broadcast %cst_39 : f32 to vector<1x256xf32>
      %c0_40 = arith.constant 0 : index
      %c0_41 = arith.constant 0 : index
      %68 = vector.load %arg10[%c0_40, %c0_41] : memref<1x256xf32, #tpu.memory_space<vmem>>, vector<1x256xf32>
      tpu.vector_store %arg10[%c0_40, %c0_41], %67 {strides = array<i32>} : memref<1x256xf32, #tpu.memory_space<vmem>>, vector<1x256xf32>,
    } else {
    }
    %c0 = arith.constant 0 : index
    %c0_1 = arith.constant 0 : index
    %c0_2 = arith.constant 0 : index
    %3 = vector.load %arg4[%c0, %c0_1, %c0_2] : memref<1x1x256xi32, #tpu.memory_space<vmem>>, vector<1x1x256xi32>
    %4 = vector.shape_cast %3 : vector<1x1x256xi32> to vector<1x256xi32>
    %c0_i32_3 = arith.constant 0 : i32
    %5 = vector.broadcast %c0_i32_3 : i32 to vector<1x256xi32>
    %6 = arith.cmpi sge, %4, %5 : vector<1x256xi32>
    %c8_i32 = arith.constant 8 : i32
    %7 = vector.broadcast %c8_i32 : i32 to vector<1x256xi32>
    %8 = arith.cmpi slt, %4, %7 : vector<1x256xi32>
    %9 = arith.andi %6, %8 : vector<1x256xi1>
    %10 = tpu.iota {dimensions = array<i32: 0>} : vector<8x256xi32>
    %11 = vector.broadcast %4 : vector<1x256xi32> to vector<8x256xi32>
    %12 = arith.cmpi eq, %10, %11 : vector<8x256xi32>
    %c0_4 = arith.constant 0 : index
    %c0_5 = arith.constant 0 : index
    %13 = vector.load %arg8[%c0_4, %c0_5] : memref<1x256xf32, #tpu.memory_space<vmem>>, vector<1x256xf32>
    %c0_6 = arith.constant 0 : index
    %c0_7 = arith.constant 0 : index
    %c0_8 = arith.constant 0 : index
    %14 = vector.load %arg2[%c0_6, %c0_7, %c0_8] : memref<1x8x256xf32, #tpu.memory_space<vmem>>, vector<1x8x256xf32>
    %15 = vector.shape_cast %14 : vector<1x8x256xf32> to vector<8x256xf32>
    %cst = arith.constant dense<0xFF800000> : vector<256xf32>
    %16 = vector.multi_reduction <maximumf>, %15, %cst [0] : vector<8x256xf32> to vector<256xf32>
    %17 = vector.shape_cast %16 : vector<256xf32> to vector<1x256xf32>
    %18 = vector.broadcast %17 : vector<1x256xf32> to vector<8x256xf32>
    %19 = arith.subf %15, %18 : vector<8x256xf32>
    %20 = math.exp %19 : vector<8x256xf32>
    %cst_9 = arith.constant dense<0.000000e+00> : vector<256xf32>
    %21 = vector.multi_reduction <add>, %20, %cst_9 [0] : vector<8x256xf32> to vector<256xf32>
    %22 = vector.shape_cast %21 : vector<256xf32> to vector<1x256xf32>
    %23 = math.log %22 : vector<1x256xf32>
    %24 = arith.addf %17, %23 : vector<1x256xf32>
    %cst_10 = arith.constant 0.000000e+00 : f32
    %25 = vector.broadcast %cst_10 : f32 to vector<8x256xf32>
    %26 = arith.select %12, %15, %25 : vector<8x256xi1>, vector<8x256xf32>
    %cst_11 = arith.constant dense<0.000000e+00> : vector<256xf32>
    %27 = vector.multi_reduction <add>, %26, %cst_11 [0] : vector<8x256xf32> to vector<256xf32>
    %28 = vector.shape_cast %27 : vector<256xf32> to vector<1x256xf32>
    %29 = arith.subf %24, %28 : vector<1x256xf32>
    %cst_12 = arith.constant 0.000000e+00 : f32
    %30 = vector.broadcast %cst_12 : f32 to vector<1x256xf32>
    %31 = arith.select %9, %29, %30 : vector<1x256xi1>, vector<1x256xf32>
    %32 = arith.addf %13, %31 : vector<1x256xf32>
    %c0_13 = arith.constant 0 : index
    %c0_14 = arith.constant 0 : index
    %33 = vector.load %arg8[%c0_13, %c0_14] : memref<1x256xf32, #tpu.memory_space<vmem>>, vector<1x256xf32>
    tpu.vector_store %arg8[%c0_13, %c0_14], %32 {strides = array<i32>} : memref<1x256xf32, #tpu.memory_space<vmem>>, vector<1x256xf32>,
    %c0_15 = arith.constant 0 : index
    %c0_16 = arith.constant 0 : index
    %34 = vector.load %arg9[%c0_15, %c0_16] : memref<1x256xf32, #tpu.memory_space<vmem>>, vector<1x256xf32>
    %c0_17 = arith.constant 0 : index
    %c0_18 = arith.constant 0 : index
    %c0_19 = arith.constant 0 : index
    %35 = vector.load %arg3[%c0_17, %c0_18, %c0_19] : memref<1x8x256xf32, #tpu.memory_space<vmem>>, vector<1x8x256xf32>
    %36 = vector.shape_cast %35 : vector<1x8x256xf32> to vector<8x256xf32>
    %cst_20 = arith.constant dense<0xFF800000> : vector<256xf32>
    %37 = vector.multi_reduction <maximumf>, %36, %cst_20 [0] : vector<8x256xf32> to vector<256xf32>
    %38 = vector.shape_cast %37 : vector<256xf32> to vector<1x256xf32>
    %39 = vector.broadcast %38 : vector<1x256xf32> to vector<8x256xf32>
    %40 = arith.subf %36, %39 : vector<8x256xf32>
    %41 = math.exp %40 : vector<8x256xf32>
    %cst_21 = arith.constant dense<0.000000e+00> : vector<256xf32>
    %42 = vector.multi_reduction <add>, %41, %cst_21 [0] : vector<8x256xf32> to vector<256xf32>
    %43 = vector.shape_cast %42 : vector<256xf32> to vector<1x256xf32>
    %44 = math.log %43 : vector<1x256xf32>
    %45 = arith.addf %38, %44 : vector<1x256xf32>
    %cst_22 = arith.constant 0.000000e+00 : f32
    %46 = vector.broadcast %cst_22 : f32 to vector<8x256xf32>
    %47 = arith.select %12, %36, %46 : vector<8x256xi1>, vector<8x256xf32>
    %cst_23 = arith.constant dense<0.000000e+00> : vector<256xf32>
    %48 = vector.multi_reduction <add>, %47, %cst_23 [0] : vector<8x256xf32> to vector<256xf32>
    %49 = vector.shape_cast %48 : vector<256xf32> to vector<1x256xf32>
    %50 = arith.subf %45, %49 : vector<1x256xf32>
    %cst_24 = arith.constant 0.000000e+00 : f32
    %51 = vector.broadcast %cst_24 : f32 to vector<1x256xf32>
    %52 = arith.select %9, %50, %51 : vector<1x256xi1>, vector<1x256xf32>
    %53 = arith.addf %34, %52 : vector<1x256xf32>
    %c0_25 = arith.constant 0 : index
    %c0_26 = arith.constant 0 : index
    %54 = vector.load %arg9[%c0_25, %c0_26] : memref<1x256xf32, #tpu.memory_space<vmem>>, vector<1x256xf32>
    tpu.vector_store %arg9[%c0_25, %c0_26], %53 {strides = array<i32>} : memref<1x256xf32, #tpu.memory_space<vmem>>, vector<1x256xf32>,
    %c0_27 = arith.constant 0 : index
    %c0_28 = arith.constant 0 : index
    %55 = vector.load %arg10[%c0_27, %c0_28] : memref<1x256xf32, #tpu.memory_space<vmem>>, vector<1x256xf32>
    %56 = arith.extui %9 : vector<1x256xi1> to vector<1x256xi32>
    %57 = arith.sitofp %56 : vector<1x256xi32> to vector<1x256xf32>
    %58 = arith.addf %55, %57 : vector<1x256xf32>
    %c0_29 = arith.constant 0 : index
    %c0_30 = arith.constant 0 : index
    %59 = vector.load %arg10[%c0_29, %c0_30] : memref<1x256xf32, #tpu.memory_space<vmem>>, vector<1x256xf32>
    tpu.vector_store %arg10[%c0_29, %c0_30], %58 {strides = array<i32>} : memref<1x256xf32, #tpu.memory_space<vmem>>, vector<1x256xf32>,
    %c0_i32_31 = arith.constant 0 : i32
    %60 = arith.cmpi eq, %arg1, %c0_i32_31 : i32
    %61 = arith.extui %60 : i1 to i32
    %c0_i32_32 = arith.constant 0 : i32
    %62 = arith.cmpi ne, %61, %c0_i32_32 : i32
    scf.if %62 {
      %c0_33 = arith.constant 0 : index
      %c0_34 = arith.constant 0 : index
      %63 = vector.load %arg8[%c0_33, %c0_34] : memref<1x256xf32, #tpu.memory_space<vmem>>, vector<1x256xf32>
      %cst_35 = arith.constant dense<0.000000e+00> : vector<1xf32>
      %64 = vector.multi_reduction <add>, %63, %cst_35 [1] : vector<1x256xf32> to vector<1xf32>
      %65 = vector.shape_cast %64 : vector<1xf32> to vector<1x1xf32>
      %c0_36 = arith.constant 0 : index
      %c0_37 = arith.constant 0 : index
      %c0_38 = arith.constant 0 : index
      %66 = vector.load %arg5[%c0_36, %c0_37, %c0_38] : memref<1x1x1xf32, #tpu.memory_space<vmem>>, vector<1x1x1xf32>
      %67 = vector.shape_cast %66 : vector<1x1x1xf32> to vector<1x1xf32>
      %68 = vector.shape_cast %65 : vector<1x1xf32> to vector<1x1x1xf32>
      tpu.vector_store %arg5[%c0_36, %c0_37, %c0_38], %68 {strides = array<i32>} : memref<1x1x1xf32, #tpu.memory_space<vmem>>, vector<1x1x1xf32>,
      %c0_39 = arith.constant 0 : index
      %c0_40 = arith.constant 0 : index
      %69 = vector.load %arg9[%c0_39, %c0_40] : memref<1x256xf32, #tpu.memory_space<vmem>>, vector<1x256xf32>
      %cst_41 = arith.constant dense<0.000000e+00> : vector<1xf32>
      %70 = vector.multi_reduction <add>, %69, %cst_41 [1] : vector<1x256xf32> to vector<1xf32>
      %71 = vector.shape_cast %70 : vector<1xf32> to vector<1x1xf32>
      %c0_42 = arith.constant 0 : index
      %c0_43 = arith.constant 0 : index
      %c0_44 = arith.constant 0 : index
      %72 = vector.load %arg6[%c0_42, %c0_43, %c0_44] : memref<1x1x1xf32, #tpu.memory_space<vmem>>, vector<1x1x1xf32>
      %73 = vector.shape_cast %72 : vector<1x1x1xf32> to vector<1x1xf32>
      %74 = vector.shape_cast %71 : vector<1x1xf32> to vector<1x1x1xf32>
      tpu.vector_store %arg6[%c0_42, %c0_43, %c0_44], %74 {strides = array<i32>} : memref<1x1x1xf32, #tpu.memory_space<vmem>>, vector<1x1x1xf32>,
      %c0_45 = arith.constant 0 : index
      %c0_46 = arith.constant 0 : index
      %75 = vector.load %arg10[%c0_45, %c0_46] : memref<1x256xf32, #tpu.memory_space<vmem>>, vector<1x256xf32>
      %cst_47 = arith.constant dense<0.000000e+00> : vector<1xf32>
      %76 = vector.multi_reduction <add>, %75, %cst_47 [1] : vector<1x256xf32> to vector<1xf32>
      %77 = vector.shape_cast %76 : vector<1xf32> to vector<1x1xf32>
      %c0_48 = arith.constant 0 : index
      %c0_49 = arith.constant 0 : index
      %c0_50 = arith.constant 0 : index
      %78 = vector.load %arg7[%c0_48, %c0_49, %c0_50] : memref<1x1x1xf32, #tpu.memory_space<vmem>>, vector<1x1x1xf32>
      %79 = vector.shape_cast %78 : vector<1x1x1xf32> to vector<1x1xf32>
      %80 = vector.shape_cast %77 : vector<1x1xf32> to vector<1x1x1xf32>
      tpu.vector_store %arg7[%c0_48, %c0_49, %c0_50], %80 {strides = array<i32>} : memref<1x1x1xf32, #tpu.memory_space<vmem>>, vector<1x1x1xf32>,
    } else {
    }
    return
  }
  func.func @transform_0(%arg0: i32, %arg1: i32) -> (i32, i32, i32) {
    %c0_i32 = arith.constant 0 : i32
    %c0_i32_0 = arith.constant 0 : i32
    return %arg0, %c0_i32, %arg1 : i32, i32, i32
  }
  func.func @transform_1(%arg0: i32, %arg1: i32) -> (i32, i32, i32) {
    %c0_i32 = arith.constant 0 : i32
    %c0_i32_0 = arith.constant 0 : i32
    return %arg0, %c0_i32, %arg1 : i32, i32, i32
  }
  func.func @transform_2(%arg0: i32, %arg1: i32) -> (i32, i32, i32) {
    %c0_i32 = arith.constant 0 : i32
    %c0_i32_0 = arith.constant 0 : i32
    return %arg0, %c0_i32, %arg1 : i32, i32, i32
  }
  func.func @transform_3(%arg0: i32, %arg1: i32) -> (i32, i32, i32) {
    %c0_i32 = arith.constant 0 : i32
    %c0_i32_0 = arith.constant 0 : i32
    %c0_i32_1 = arith.constant 0 : i32
    return %arg0, %c0_i32, %c0_i32_0 : i32, i32, i32
  }
  func.func @transform_4(%arg0: i32, %arg1: i32) -> (i32, i32, i32) {
    %c0_i32 = arith.constant 0 : i32
    %c0_i32_0 = arith.constant 0 : i32
    %c0_i32_1 = arith.constant 0 : i32
    return %arg0, %c0_i32, %c0_i32_0 : i32, i32, i32
  }
  func.func @transform_5(%arg0: i32, %arg1: i32) -> (i32, i32, i32) {
    %c0_i32 = arith.constant 0 : i32
    %c0_i32_0 = arith.constant 0 : i32
    %c0_i32_1 = arith.constant 0 : i32
    return %arg0, %c0_i32, %c0_i32_0 : i32, i32, i32
  }
}

</mosaic_0001>

<bundles_post_ra>
// kernel: psp_loss.1
= control target key start
LH: loop header
LB: loop body
LE: loop exit
PB: predicated region body
PF: predicated region fallthrough
CT: control target
= control target key end

     0   :  { %s787_s18 = smov 0   ;;  %s789_s19 = smov 0   ;;  %s893_s0 = inlined_call_operand.vmem [shape: f32[2,8,256], index: 0, kind: input, shape index: {}]   ;;  %s894_s1 = inlined_call_operand.vmem [shape: f32[2,8,256], index: 1, kind: input, shape index: {}]   ;;  %s895_s2 = inlined_call_operand.vmem [shape: s32[2,1,256], index: 2, kind: input, shape index: {}]   ;;  %s896_s3 = inlined_call_operand.vmem [shape: f32[2,1,1], index: 3, kind: output, shape index: {0}]   ;;  %s897_s4 = inlined_call_operand.vmem [shape: f32[2,1,1], index: 4, kind: output, shape index: {1}]   ;;  %s898_s5 = inlined_call_operand.vmem [shape: f32[2,1,1], index: 5, kind: output, shape index: {2}]  }
   0x1   :  { %s791_s20 = smov 0  }
   0x2 LB: > { %s28_s21 = sadd.s32 1, %s750_s19  ;;  %p680_p0 = scmp.ge.s32.totalorder %s754_s20, 1  ;;  %s754_s20 = sphi %s791_s20, %s16_s20   ;;  %s750_s19 = sphi %s789_s19, %s904_s19   ;;  %s746_s18 = sphi %s787_s18, %s903_s18  }
   0x3   : > { %p30_p1 = scmp.ge.s32.totalorder %s28_s21, 2  ;;  %p244_p2 = scmp.lt.s32.totalorder %s754_s20, 3 }
   0x5   : > { %s906_s21 = smov (%p30_p1, %s28_s21), 0  ;;  %p245_p3 = pnand %p680_p0, %p244_p2 }
   0x6   : > { %p298_p4 = scmp.lt.s32.totalorder (!%p245_p3), %s746_s18, 1 }
   0x7   : > { %248 = sbr.rel (%p245_p3) target bundleno = 209 (0xd1), region = 32 }
   0xc   : > { %v339_v0 = vlaneseq  ;;  %s908_s18 = smov (!%p298_p4, %s746_s18), 1  ;;  %v756_v2 = vmov 0.0   ;;  %vm414_vm6 = vcmask 1040384   ;;  %vm506_vm7 = vcmask 0  }
   0xd   : > { %s689_s22 = sshll.u32 %s908_s18, 4  ;;  %s685_s29 = sshll.u32 %s908_s18, 1 }
   0xe   : > { %vm807_vm0 = vcmp.lt.s32.totalorder %v339_v0, 256  ;;  %s305_s25 = scalar_lea.vmem %s893_s0, %s689_s22  ;;  %s315_s28 = scalar_lea.vmem %s894_s1, %s689_s22  ;;  %v351_v31 = vshrl.u32 %v339_v0, 7 }
   0xf   : > { %343 = vst.msk [vmem:[#allocation2] sm:$0x3] %vm807_vm0, %v756_v2  ;;  %v357_v3 = vld [vmem:[%s305_s25] sm:$0xff]  ;;  %v358_v4 = vld [vmem:[%s305_s25 + $0x8] sm:$0xff]  ;;  %s324_s7 = scalar_lea.vmem %s895_s2, %s685_s29  ;;  %s334_s10 = scalar_lea.vmem %s898_s5, %s908_s18 }
  0x10   : > { %344 = vst.msk [vmem:[#allocation3] sm:$0x3] %vm807_vm0, %v756_v2  ;;  %v425_v5 = vld [vmem:[%s315_s28] sm:$0xff]  ;;  %v359_v6 = vrot.slane %v357_v3, 4  ;;  %v365_v7 = vrot.slane %v358_v4, 4  ;;  %v426_v8 = vld [vmem:[%s315_s28 + $0x8] sm:$0xff]  ;;  %s328_s13 = scalar_lea.vmem %s896_s3, %s908_s18  ;;  %s331_s16 = scalar_lea.vmem %s897_s4, %s908_s18 }
  0x11   : > { %345 = vst.msk [vmem:[#allocation4] sm:$0x3] %vm807_vm0, %v756_v2  ;;  %v427_v9 = vrot.slane %v425_v5, 4  ;;  %v433_v13 = vrot.slane %v426_v8, 4  ;;  %v346_v26 = vld [vmem:[%s324_s7] sm:$0x3] }
  0x12   : > { %v360_v10 = vmax.f32 %v357_v3, %v359_v6  ;;  %v366_v11 = vmax.f32 %v358_v4, %v365_v7  ;;  %v352_v34 = vperm.slane %v346_v26, 0  ;;  %v353_v35 = vperm.slane %v346_v26, 1 }
  0x13   : > { %v428_v12 = vmax.f32 %v425_v5, %v427_v9  ;;  %v434_v17 = vmax.f32 %v426_v8, %v433_v13  ;;  %vm347_vm3 = vcmp.ge.s32.totalorder %v346_v26, 0  ;;  %vm348_vm4 = vcmp.lt.s32.totalorder %v346_v26, 8 }
  0x14   : > { %v361_v14 = vrot.slane %v360_v10, 2  ;;  %v367_v15 = vrot.slane %v366_v11, 2  ;;  %vm354_vm1 = vcmp.eq.s32.totalorder %v351_v31, %v352_v34  ;;  %vm355_vm2 = vcmp.eq.s32.totalorder %v351_v31, %v353_v35  ;;  %vm843_vm5 = vmand %vm347_vm3, %vm348_vm4 }
  0x15   : > { %v429_v16 = vrot.slane %v428_v12, 2  ;;  %v435_v21 = vrot.slane %v434_v17, 2  ;;  %v395_v43 = vsel %vm354_vm1, %v357_v3, 0.0  ;;  %v396_v44 = vsel %vm355_vm2, %v358_v4, 0.0 }
  0x16   : > { %v362_v18 = vmax.f32 %v360_v10, %v361_v14  ;;  %v368_v19 = vmax.f32 %v366_v11, %v367_v15  ;;  %v464_v45 = vsel %vm355_vm2, %v426_v8, 0.0  ;;  %v463_v48 = vsel %vm354_vm1, %v425_v5, 0.0 }
  0x17   : > { %v430_v20 = vmax.f32 %v428_v12, %v429_v16  ;;  %v436_v25 = vmax.f32 %v434_v17, %v435_v21  ;;  %v397_v51 = vrot.slane %v395_v43, 4  ;;  %v403_v52 = vrot.slane %v396_v44, 4 }
  0x18   : > { %v363_v22 = vrot.slane %v362_v18, 1  ;;  %v369_v23 = vrot.slane %v368_v19, 1  ;;  %v487_v53 = vld [vmem:[#allocation4] sm:$0x3]  ;;  %v686_v54 = vsel %vm843_vm5, 1.0, %v756_v2  ;;  %v471_v57 = vrot.slane %v464_v45, 4 }
  0x19   : > { %v431_v24 = vrot.slane %v430_v20, 1  ;;  %v437_v30 = vrot.slane %v436_v25, 1  ;;  %v490_v58 = vadd.f32 %v686_v54, %v487_v53  ;;  %v465_v62 = vrot.slane %v463_v48, 4 }
  0x1a   : > { %v831_v27 = vmax.f32 %v362_v18, %v363_v22  ;;  %v833_v28 = vmax.f32 %v368_v19, %v369_v23  ;;  %v472_v2 = vadd.f32 %v471_v57, %v464_v45 }
  0x1b   : > { %v835_v29 = vmax.f32 %v430_v20, %v431_v24  ;;  %v839_v36 = vmax.f32 %v436_v25, %v437_v30  ;;  %491 = vst.msk [vmem:[#allocation4] sm:$0x3] %vm807_vm0, %v490_v58  ;;  %v466_v11 = vadd.f32 %v465_v62, %v463_v48 }
  0x1c   : > { %v371_v32 = vsub.f32 %v357_v3, %v831_v27  ;;  %v372_v33 = vsub.f32 %v358_v4, %v833_v28  ;;  %v398_v4 = vadd.f32 %v397_v51, %v395_v43  ;;  %v473_v20 = vrot.slane %v472_v2, 2 }
  0x1d   : > { %v439_v37 = vsub.f32 %v425_v5, %v835_v29  ;;  %v440_v40 = vsub.f32 %v426_v8, %v839_v36  ;;  %v404_v5 = vadd.f32 %v403_v52, %v396_v44  ;;  %v467_v23 = vrot.slane %v466_v11, 2 }
  0x1e   : > { %v373_v38 = vmul.f32 1.442695, %v371_v32  ;;  %v375_v39 = vmul.f32 1.442695, %v372_v33  ;;  %v399_v15 = vrot.slane %v398_v4, 2  ;;  %v474_v33 = vadd.f32 %v473_v20, %v472_v2 }
  0x1f   : > { %v441_v41 = vmul.f32 1.442695, %v439_v37  ;;  %v443_v42 = vmul.f32 1.442695, %v440_v40  ;;  %v405_v16 = vrot.slane %v404_v5, 2  ;;  %v468_v35 = vadd.f32 %v467_v23, %v466_v11 }
  0x20   : > { %716 = vpow2.f32 %v373_v38  ;;  %v400_v26 = vadd.f32 %v399_v15, %v398_v4 }
  0x21   : > { %718 = vpow2.f32 %v375_v39  ;;  %v406_v30 = vadd.f32 %v405_v16, %v404_v5  ;;  %v469_v45 = vrot.slane %v468_v35, 1 }
  0x22   : > { %720 = vpow2.f32 %v441_v41  ;;  %v520_v34 = vld [vmem:[#allocation4] sm:$0x3]  ;;  %v401_v39 = vrot.slane %v400_v26, 1 }
  0x23   : > { %722 = vpow2.f32 %v443_v42  ;;  %v522_v37 = vperm.slane %v520_v34, 0  ;;  %v523_v38 = vperm.slane %v520_v34, 1  ;;  %v407_v40 = vrot.slane %v406_v30, 1 }
  0x24   : > { %v402_v52 = vadd.f32 %v401_v39, %v400_v26 }
  0x25   : > { %v526_v41 = vsel %vm414_vm6, %v522_v37, 0.0  ;;  %v527_v42 = vsel %vm414_vm6, %v523_v38, 0.0  ;;  %v408_v53 = vadd.f32 %v407_v40, %v406_v30 }
  0x26   : > { %v717_v46 = vpop.eup %716  ;;  %v528_v43 = vadd.f32 %v527_v42, %v526_v41 }
  0x27   : > { %v719_v49 = vpop.eup %718  ;;  %v377_v50 = vrot.slane %v717_v46, 4 }
  0x28   : > { %v721_v55 = vpop.eup %720  ;;  %v383_v56 = vrot.slane %v719_v49, 4  ;;  %529 = vadd.xlane.f32.xlu1 %v528_v43 }
  0x29   : > { %v723_v59 = vpop.eup %722  ;;  %v378_v60 = vadd.f32 %v717_v46, %v377_v50  ;;  %v445_v61 = vrot.slane %v721_v55, 4  ;;  %v475_v46 = vrot.slane %v474_v33, 1 }
  0x2a   : > { %v384_v63 = vadd.f32 %v719_v49, %v383_v56  ;;  %v451_v0 = vrot.slane %v723_v59, 4 }
  0x2b   : > { %v379_v3 = vrot.slane %v378_v60, 2  ;;  %v446_v6 = vadd.f32 %v721_v55, %v445_v61 }
  0x2c   : > { %v385_v7 = vrot.slane %v384_v63, 2  ;;  %v452_v8 = vadd.f32 %v723_v59, %v451_v0  ;;  %v470_v59 = vadd.f32 %v469_v45, %v468_v35 }
  0x2d   : > { %v380_v9 = vadd.f32 %v379_v3, %v378_v60  ;;  %v447_v10 = vrot.slane %v446_v6, 2  ;;  %v476_v60 = vadd.f32 %v475_v46, %v474_v33 }
  0x2e   : > { %v386_v12 = vadd.f32 %v385_v7, %v384_v63  ;;  %v453_v13 = vrot.slane %v452_v8, 2 }
  0x2f   : > { %v381_v14 = vrot.slane %v380_v9, 1  ;;  %v448_v17 = vadd.f32 %v447_v10, %v446_v6  ;;  %v356_v6 = vld [vmem:[#allocation2] sm:$0x3] }
  0x30   : > { %v387_v18 = vrot.slane %v386_v12, 1  ;;  %v454_v19 = vadd.f32 %v453_v13, %v452_v8 }
  0x31   : > { %v382_v21 = vadd.f32 %v381_v14, %v380_v9  ;;  %v449_v22 = vrot.slane %v448_v17, 1 }
  0x32   : > { %v388_v24 = vadd.f32 %v387_v18, %v386_v12  ;;  %v455_v25 = vrot.slane %v454_v19, 1 }
  0x33   : > { %724 = vlog2.f32 %v382_v21  ;;  %v450_v31 = vadd.f32 %v449_v22, %v448_v17 }
  0x34   : > { %726 = vlog2.f32 %v388_v24  ;;  %v456_v32 = vadd.f32 %v455_v25, %v454_v19 }
  0x35   : > { %728 = vlog2.f32 %v450_v31 }
  0x36   : > { %730 = vlog2.f32 %v456_v32 }
  0x39   : > { %v725_v44 = vpop.eup %724 }
  0x3a   : > { %v727_v48 = vpop.eup %726  ;;  %v390_v49 = vmul.f32 0.6931472, %v725_v44 }
  0x3b   : > { %v729_v50 = vpop.eup %728  ;;  %v392_v51 = vmul.f32 0.6931472, %v727_v48 }
  0x3c   : > { %v731_v54 = vpop.eup %730  ;;  %v393_v55 = vadd.f32 %v390_v49, %v831_v27  ;;  %v458_v56 = vmul.f32 0.6931472, %v729_v50 }
  0x3d   : > { %v394_v57 = vadd.f32 %v392_v51, %v833_v28  ;;  %v460_v58 = vmul.f32 0.6931472, %v731_v54  ;;  %v424_v28 = vld [vmem:[#allocation3] sm:$0x3] }
  0x3e   : > { %v461_v61 = vadd.f32 %v458_v56, %v835_v29  ;;  %v409_v62 = vsub.f32 %v393_v55, %v402_v52 }
  0x3f   : > { %v410_v63 = vsub.f32 %v394_v57, %v408_v53  ;;  %v462_v0 = vadd.f32 %v460_v58, %v839_v36 }
  0x40   : > { %v477_v4 = vsub.f32 %v461_v61, %v470_v59 }
  0x41   : > { %v413_v3 = vrot.slane %v410_v63, 7  ;;  %v478_v5 = vsub.f32 %v462_v0, %v476_v60 }
  0x43   : > { %v415_v7 = vsel %vm414_vm6, %v409_v62, %v413_v3  ;;  %v481_v8 = vrot.slane %v478_v5, 7 }
  0x44   : > { %v417_v27 = vsel %vm843_vm5, %v415_v7, 0.0 }
  0x45   : > { %v418_v2 = vadd.f32 %v417_v27, %v356_v6  ;;  %v482_v9 = vsel %vm414_vm6, %v477_v4, %v481_v8 }
  0x46   : > { %v484_v29 = vsel %vm843_vm5, %v482_v9, 0.0 }
  0x47   : > { %423 = vst.msk [vmem:[#allocation2] sm:$0x3] %vm807_vm0, %v418_v2  ;;  %v485_v36 = vadd.f32 %v484_v29, %v424_v28 }
  0x49   : > { %486 = vst.msk [vmem:[#allocation3] sm:$0x3] %vm807_vm0, %v485_v36 }
  0x4e   : > { %v495_v10 = vld [vmem:[#allocation2] sm:$0x3] }
  0x4f   : > { %v497_v11 = vperm.slane %v495_v10, 0  ;;  %v498_v12 = vperm.slane %v495_v10, 1 }
  0x50   : > { %v508_v13 = vld [vmem:[#allocation3] sm:$0x3] }
  0x51   : > { %v501_v14 = vsel %vm414_vm6, %v497_v11, 0.0  ;;  %v502_v15 = vsel %vm414_vm6, %v498_v12, 0.0  ;;  %v510_v47 = vperm.slane %v508_v13, 0  ;;  %v511_v16 = vperm.slane %v508_v13, 1 }
  0x52   : > { %v503_v17 = vadd.f32 %v502_v15, %v501_v14 }
  0x53   : > { %v514_v18 = vsel %vm414_vm6, %v510_v47, 0.0  ;;  %v515_v1 = vsel %vm414_vm6, %v511_v16, 0.0 }
  0x54   : > { %504 = vadd.xlane.f32.xlu0 %v503_v17  ;;  %v516_v19 = vadd.f32 %v515_v1, %v514_v18 }
  0x5c   : > { %517 = vadd.xlane.f32.xlu0 %v516_v19 }
  0x9b   : > { %v530_v20 = vpop.xlane.xlu1 %529 }
  0x9c   : > { %531 = vst.msk [vmem:[%s334_s10] sm:$0x1] %vm506_vm7, %v530_v20 }
  0xc7   : > { %v505_v21 = vpop.xlane.xlu0 %504 }
  0xc8   : > { %507 = vst.msk [vmem:[%s328_s13] sm:$0x1] %vm506_vm7, %v505_v21 }
  0xcf   : > { %v518_v22 = vpop.xlane.xlu0 %517 }
  0xd0   : > { %519 = vst.msk [vmem:[%s331_s16] sm:$0x1] %vm506_vm7, %v518_v22 }
  0xd1 PF: > { %s16_s20 = sadd.s32 1, %s754_s20   ;;  %s903_s18 = smov %s750_s19 }
  0xd2   : > { %p13_p5 = scmp.ge.s32.totalorder %s16_s20, 4   ;;  %s904_s19 = smov %s906_s21 }
  0xd4   :  { %15 = sbr.rel (!%p13_p5) target bundleno = 2 (0x2), region = 100 }

</bundles_post_ra>
